<compile_context>
chip_gen: v7x
topology: tpu7x:2x2x1
jax: 0.10.0
libtpu: 0.0.40
codegen_flags: <defaults>
</compile_context>

<pallas_src>
import numpy as np
import jax
import jax.numpy as jnp
from jax.experimental import pallas as pl
from jax.experimental.pallas import tpu as pltpu

KERNEL_SIZE = 11
SIGMA = 1.5
C1 = 0.01 ** 2
C2 = 0.03 ** 2
EPS = 1e-12  # matches the `denominator + 1e-12` in the PyTorch reference

# MXU operand dtype for the two blur matmuls (accumulation is always f32).
# Kept at f32 because the SSIM variance terms are cancellation-sensitive.
MATMUL_DTYPE = jnp.float32


def _gaussian_1d(kernel_size: int, sigma: float) -> np.ndarray:
    # Mirrors SSIMLoss._create_gaussian_kernel's 1-D kernel.
    start = (1 - kernel_size) / 2
    end = (1 + kernel_size) / 2
    k = np.arange(start, end, step=1, dtype=np.float32)
    k = np.exp(-np.power(k / sigma, 2) / 2)
    return (k / k.sum()).astype(np.float32)


G1D = _gaussian_1d(KERNEL_SIZE, SIGMA)


def _blur_matrix(n: int, g1d: np.ndarray) -> np.ndarray:
    """Banded (n, n) matrix M with M[p, r] = g[r - p + pad] (zero "same" pad)."""
    K = len(g1d)
    pad = K // 2
    M = np.zeros((n, n), dtype=np.float32)
    for p in range(n):
        for t in range(K):
            r = p + t - pad
            if 0 <= r < n:
                M[p, r] = g1d[t]
    return M


# ----------------------------- Pallas kernels ------------------------------ #

def _ssim_map_packed(a5_ref, bbd_ref, xl_ref, y_ref):
    """SSIM map for one packed block of P images laid out as (H, P*W)."""
    A5 = a5_ref[...]                                   # (5H, 5H) block-diag row blur
    Bbd = bbd_ref[...]                                 # (PW, PW) block-diag col blur
    x = jax.nn.sigmoid(xl_ref[0].astype(jnp.float32))  # (H, PW)
    yv = y_ref[0].astype(jnp.float32)                  # (H, PW)
    H = x.shape[0]

    # Fuse the five blur operands into one (5H, PW) slab (sublane stack, H%8==0).
    slab = jnp.concatenate([x, yv, x * x, yv * yv, x * yv], axis=0)
    slab = slab.astype(MATMUL_DTYPE)

    # Two MXU matmuls replace ten: row blur then column blur, f32 accumulation.
    u = jnp.dot(A5, slab, preferred_element_type=jnp.float32)
    v = jnp.dot(u.astype(MATMUL_DTYPE), Bbd, preferred_element_type=jnp.float32)

    ux = v[0 * H:1 * H]
    uy = v[1 * H:2 * H]
    uxx = v[2 * H:3 * H]
    uyy = v[3 * H:4 * H]
    uxy = v[4 * H:5 * H]

    vx = uxx - ux * ux
    vy = uyy - uy * uy
    vxy = uxy - ux * uy

    numerator = (2.0 * ux * uy + C1) * (2.0 * vxy + C2)
    denominator = (ux * ux + uy * uy + C1) * (vx + vy + C2)
    # EUP approximate reciprocal (free VLIW slot); error << checked tolerance.
    return numerator * pl.reciprocal(denominator + EPS, approx=True)


def ssim_map_kernel(a5_ref, bbd_ref, xl_ref, y_ref, map_ref):
    map_ref[0] = _ssim_map_packed(a5_ref, bbd_ref, xl_ref, y_ref)


def ssim_colsum_kernel(a5_ref, bbd_ref, xl_ref, y_ref, csum_ref):
    ssim = _ssim_map_packed(a5_ref, bbd_ref, xl_ref, y_ref)
    # Sum over H only; lane-dense (1, PW) writeback, per-image reduce in wrapper.
    csum_ref[0] = jnp.sum(ssim, axis=0, keepdims=True)


# ------------------------------- wrapper ----------------------------------- #

def ssim_loss(x_logits, y, as_loss: bool = True):
    """JAX/Pallas equivalent of SSIMLoss.forward (NCHW inputs, C must be 1)."""
    N, C, H, W = x_logits.shape
    assert C == 1, "groups=1 conv with a (3,1,K,K) weight requires 1 input channel"

    # ---- pack P images along the lane axis so the last dim is >= 128 ------- #
    P = max(1, 128 // W)
    G = -(-N // P)
    N_pad = G * P

    xl = x_logits.reshape(N, H, W).astype(jnp.float32)
    yv = y.reshape(N, H, W).astype(jnp.float32)
    if N_pad != N:
        pad = ((0, N_pad - N), (0, 0), (0, 0))
        xl = jnp.pad(xl, pad)
        yv = jnp.pad(yv, pad)
    # (G, P, H, W) -> (G, H, P, W) -> (G, H, P*W): images side by side in lanes.
    xl_p = xl.reshape(G, P, H, W).transpose(0, 2, 1, 3).reshape(G, H, P * W)
    yv_p = yv.reshape(G, P, H, W).transpose(0, 2, 1, 3).reshape(G, H, P * W)

    # ---- compile-time blur constants (fold zero "same" padding) ------------ #
    A = _blur_matrix(H, G1D)                        # (H, H): row blur (over H)
    B = _blur_matrix(W, G1D).T                      # (W, W): col blur (over W)
    A5 = jnp.asarray(np.kron(np.eye(5, dtype=np.float32), A), dtype=MATMUL_DTYPE)
    Bbd = jnp.asarray(np.kron(np.eye(P, dtype=np.float32), B), dtype=MATMUL_DTYPE)

    in_specs = [
        pl.BlockSpec((5 * H, 5 * H), lambda i: (0, 0)),      # A5, DMA'd once
        pl.BlockSpec((P * W, P * W), lambda i: (0, 0)),      # Bbd, DMA'd once
        pl.BlockSpec((1, H, P * W), lambda i: (i, 0, 0)),    # packed logits
        pl.BlockSpec((1, H, P * W), lambda i: (i, 0, 0)),    # packed targets
    ]
    cparams = pltpu.CompilerParams(dimension_semantics=("parallel",))

    if as_loss:
        # Sum-only kernel: per-column SSIM sums (no (N,H,W) HBM writeback).
        csums = pl.pallas_call(
            ssim_colsum_kernel,
            out_shape=jax.ShapeDtypeStruct((G, 1, P * W), jnp.float32),
            grid_spec=pltpu.PrefetchScalarGridSpec(
                num_scalar_prefetch=0,
                grid=(G,),
                in_specs=in_specs,
                out_specs=pl.BlockSpec((1, 1, P * W), lambda i: (i, 0, 0)),
            ),
            compiler_params=cparams,
        )(A5, Bbd, xl_p, yv_p)
        per_image = csums.reshape(G, P, W).sum(axis=2).reshape(N_pad)[:N]
        # PyTorch map is (N,3,H,W) with 3 identical channels -> same mean.
        return 1.0 - jnp.sum(per_image) / (N * H * W)

    map_packed = pl.pallas_call(
        ssim_map_kernel,
        out_shape=jax.ShapeDtypeStruct((G, H, P * W), jnp.float32),
        grid_spec=pltpu.PrefetchScalarGridSpec(
            num_scalar_prefetch=0,
            grid=(G,),
            in_specs=in_specs,
            out_specs=pl.BlockSpec((1, H, P * W), lambda i: (i, 0, 0)),
        ),
        compiler_params=cparams,
    )(A5, Bbd, xl_p, yv_p)
    ssim_1c = (map_packed.reshape(G, H, P, W)
               .transpose(0, 2, 1, 3)
               .reshape(N_pad, H, W)[:N])
    # Replicate to the 3 identical output channels of the PyTorch conv weight.
    return jnp.broadcast_to(ssim_1c[:, None, :, :], (N, 3, H, W))


# --------------------------- NumPy reference -------------------------------- #

def _ssim_reference(x_logits_np, y_np):
    """Independent NumPy mirror of the PyTorch module (single channel)."""
    x = 1.0 / (1.0 + np.exp(-np.asarray(x_logits_np, np.float64)))
    y = np.asarray(y_np, np.float64)
    N, C, H, W = x.shape
    g2d = np.outer(G1D, G1D).astype(np.float64)
    pad = KERNEL_SIZE // 2

    def blur(img):
        p = np.pad(img, ((0, 0), (0, 0), (pad, pad), (pad, pad)))
        out = np.zeros_like(img)
        for i in range(KERNEL_SIZE):
            for j in range(KERNEL_SIZE):
                out += g2d[i, j] * p[:, :, i:i + H, j:j + W]
        return out

    ux, uy = blur(x), blur(y)
    uxx, uyy, uxy = blur(x * x), blur(y * y), blur(x * y)
    vx = uxx - ux * ux
    vy = uyy - uy * uy
    vxy = uxy - ux * uy
    num = (2 * ux * uy + C1) * (2 * vxy + C2)
    den = (ux ** 2 + uy ** 2 + C1) * (vx + vy + C2)
    return num / (den + EPS)


if __name__ == "__main__":
    key = jax.random.PRNGKey(0)
    k1, k2, k3, k4 = jax.random.split(key, 4)

    # ---- main case: N=2, C=1, 16x16 (single packed grid step) -------------- #
    N, C, H, W = 2, 1, 16, 16
    x_logits = jax.random.normal(k1, (N, C, H, W), dtype=jnp.float32)
    y = jax.random.uniform(k2, (N, C, H, W), dtype=jnp.float32)

    loss = ssim_loss(x_logits, y, as_loss=True)
    ssim_map = ssim_loss(x_logits, y, as_loss=False)
    jax.block_until_ready(loss)
    jax.block_until_ready(ssim_map)

    assert loss.shape == ()
    assert ssim_map.shape == (N, 3, H, W)

    ref_map = _ssim_reference(np.asarray(x_logits), np.asarray(y))      # (N,1,H,W)
    ref_loss = 1.0 - ref_map.mean()
    np.testing.assert_allclose(np.asarray(ssim_map[:, 0]), ref_map[:, 0],
                               rtol=5e-3, atol=2e-3)
    np.testing.assert_allclose(np.asarray(ssim_map[:, 2]), ref_map[:, 0],
                               rtol=5e-3, atol=2e-3)
    np.testing.assert_allclose(float(loss), float(ref_loss), rtol=5e-3, atol=1e-3)

    # ---- second case: N=9 exercises a multi-step grid + batch padding ------ #
    N2 = 9
    x2 = jax.random.normal(k3, (N2, 1, H, W), dtype=jnp.float32)
    y2 = jax.random.uniform(k4, (N2, 1, H, W), dtype=jnp.float32)
    loss2 = ssim_loss(x2, y2, as_loss=True)
    jax.block_until_ready(loss2)
    ref_loss2 = 1.0 - _ssim_reference(np.asarray(x2), np.asarray(y2)).mean()
    np.testing.assert_allclose(float(loss2), float(ref_loss2), rtol=5e-3, atol=1e-3)

    print("KERNEL_OK")
</pallas_src>

<mosaic_0001>
module attributes {stable_mosaic.version = 11 : i64} {
  func.func @ssim_colsum_kernel(%arg0: i32, %arg1: memref<80x80xf32, #tpu.memory_space<vmem>>, %arg2: memref<128x128xf32, #tpu.memory_space<vmem>>, %arg3: memref<1x16x128xf32, #tpu.memory_space<vmem>>, %arg4: memref<1x16x128xf32, #tpu.memory_space<vmem>>, %arg5: memref<1x1x128xf32, #tpu.memory_space<vmem>>) attributes {dimension_semantics = [#tpu.dimension_semantics<parallel>], iteration_bounds = array<i64: 1>, scalar_prefetch = 0 : i64, scratch_operands = 0 : i64, tpu.core_type = #tpu.core_type<tc>, window_params = [{pipeline_mode = #tpu.pipeline_mode<synchronous>, transform_indices = @transform_0, window_bounds = array<i64: 80, 80>}, {pipeline_mode = #tpu.pipeline_mode<synchronous>, transform_indices = @transform_1, window_bounds = array<i64: 128, 128>}, {transform_indices = @transform_2, window_bounds = array<i64: 1, 16, 128>}, {transform_indices = @transform_3, window_bounds = array<i64: 1, 16, 128>}, {transform_indices = @transform_4, window_bounds = array<i64: 1, 1, 128>}]} {
    %c0 = arith.constant 0 : index
    %c0_0 = arith.constant 0 : index
    %0 = vector.load %arg1[%c0, %c0_0] : memref<80x80xf32, #tpu.memory_space<vmem>>, vector<80x80xf32>
    %c0_1 = arith.constant 0 : index
    %c0_2 = arith.constant 0 : index
    %1 = vector.load %arg2[%c0_1, %c0_2] : memref<128x128xf32, #tpu.memory_space<vmem>>, vector<128x128xf32>
    %c0_3 = arith.constant 0 : index
    %c0_4 = arith.constant 0 : index
    %c0_5 = arith.constant 0 : index
    %2 = vector.load %arg3[%c0_3, %c0_4, %c0_5] : memref<1x16x128xf32, #tpu.memory_space<vmem>>, vector<1x16x128xf32>
    %3 = vector.shape_cast %2 : vector<1x16x128xf32> to vector<16x128xf32>
    %4 = arith.negf %3 : vector<16x128xf32>
    %5 = math.exp %4 : vector<16x128xf32>
    %cst = arith.constant 1.000000e+00 : f32
    %6 = vector.broadcast %cst : f32 to vector<16x128xf32>
    %7 = arith.addf %6, %5 : vector<16x128xf32>
    %8 = arith.divf %6, %7 : vector<16x128xf32>
    %c0_6 = arith.constant 0 : index
    %c0_7 = arith.constant 0 : index
    %c0_8 = arith.constant 0 : index
    %9 = vector.load %arg4[%c0_6, %c0_7, %c0_8] : memref<1x16x128xf32, #tpu.memory_space<vmem>>, vector<1x16x128xf32>
    %10 = vector.shape_cast %9 : vector<1x16x128xf32> to vector<16x128xf32>
    %11 = arith.mulf %8, %8 : vector<16x128xf32>
    %12 = arith.mulf %10, %10 : vector<16x128xf32>
    %13 = arith.mulf %8, %10 : vector<16x128xf32>
    %14 = tpu.concatenate %8, %10, %11, %12, %13 in 0 : vector<16x128xf32>, vector<16x128xf32>, vector<16x128xf32>, vector<16x128xf32>, vector<16x128xf32> -> vector<80x128xf32>
    %cst_9 = arith.constant dense<0.000000e+00> : vector<80x128xf32>
    %15 = tpu.matmul %0, %14, %cst_9 {dimension_numbers = #tpu.dot_dimension_numbers<[1], [0], [0], [1], [0, 0, 1, 1], [], []>} : vector<80x80xf32>, vector<80x128xf32>, vector<80x128xf32> -> vector<80x128xf32>
    %cst_10 = arith.constant dense<0.000000e+00> : vector<80x128xf32>
    %16 = tpu.matmul %15, %1, %cst_10 {dimension_numbers = #tpu.dot_dimension_numbers<[1], [0], [0], [1], [0, 0, 1, 1], [], []>} : vector<80x128xf32>, vector<128x128xf32>, vector<80x128xf32> -> vector<80x128xf32>
    %17 = vector.extract_strided_slice %16 {offsets = [0, 0], sizes = [16, 128], strides = [1, 1]} : vector<80x128xf32> to vector<16x128xf32>
    %18 = vector.extract_strided_slice %16 {offsets = [16, 0], sizes = [16, 128], strides = [1, 1]} : vector<80x128xf32> to vector<16x128xf32>
    %19 = vector.extract_strided_slice %16 {offsets = [32, 0], sizes = [16, 128], strides = [1, 1]} : vector<80x128xf32> to vector<16x128xf32>
    %20 = vector.extract_strided_slice %16 {offsets = [48, 0], sizes = [16, 128], strides = [1, 1]} : vector<80x128xf32> to vector<16x128xf32>
    %21 = vector.extract_strided_slice %16 {offsets = [64, 0], sizes = [16, 128], strides = [1, 1]} : vector<80x128xf32> to vector<16x128xf32>
    %22 = arith.mulf %17, %17 : vector<16x128xf32>
    %23 = arith.subf %19, %22 : vector<16x128xf32>
    %24 = arith.mulf %18, %18 : vector<16x128xf32>
    %25 = arith.subf %20, %24 : vector<16x128xf32>
    %26 = arith.mulf %17, %18 : vector<16x128xf32>
    %27 = arith.subf %21, %26 : vector<16x128xf32>
    %cst_11 = arith.constant 2.000000e+00 : f32
    %28 = vector.broadcast %cst_11 : f32 to vector<16x128xf32>
    %29 = arith.mulf %28, %17 : vector<16x128xf32>
    %30 = arith.mulf %29, %18 : vector<16x128xf32>
    %cst_12 = arith.constant 9.99999974E-5 : f32
    %31 = vector.broadcast %cst_12 : f32 to vector<16x128xf32>
    %32 = arith.addf %30, %31 : vector<16x128xf32>
    %cst_13 = arith.constant 2.000000e+00 : f32
    %33 = vector.broadcast %cst_13 : f32 to vector<16x128xf32>
    %34 = arith.mulf %33, %27 : vector<16x128xf32>
    %cst_14 = arith.constant 8.99999984E-4 : f32
    %35 = vector.broadcast %cst_14 : f32 to vector<16x128xf32>
    %36 = arith.addf %34, %35 : vector<16x128xf32>
    %37 = arith.mulf %32, %36 : vector<16x128xf32>
    %38 = arith.mulf %17, %17 : vector<16x128xf32>
    %39 = arith.mulf %18, %18 : vector<16x128xf32>
    %40 = arith.addf %38, %39 : vector<16x128xf32>
    %cst_15 = arith.constant 9.99999974E-5 : f32
    %41 = vector.broadcast %cst_15 : f32 to vector<16x128xf32>
    %42 = arith.addf %40, %41 : vector<16x128xf32>
    %43 = arith.addf %23, %25 : vector<16x128xf32>
    %cst_16 = arith.constant 8.99999984E-4 : f32
    %44 = vector.broadcast %cst_16 : f32 to vector<16x128xf32>
    %45 = arith.addf %43, %44 : vector<16x128xf32>
    %46 = arith.mulf %42, %45 : vector<16x128xf32>
    %cst_17 = arith.constant 9.99999996E-13 : f32
    %47 = vector.broadcast %cst_17 : f32 to vector<16x128xf32>
    %48 = arith.addf %46, %47 : vector<16x128xf32>
    %49 = tpu.reciprocal %48 {approx = true} : vector<16x128xf32> -> vector<16x128xf32>
    %50 = arith.mulf %37, %49 : vector<16x128xf32>
    %cst_18 = arith.constant dense<0.000000e+00> : vector<128xf32>
    %51 = vector.multi_reduction <add>, %50, %cst_18 [0] : vector<16x128xf32> to vector<128xf32>
    %52 = vector.shape_cast %51 : vector<128xf32> to vector<1x128xf32>
    %c0_19 = arith.constant 0 : index
    %c0_20 = arith.constant 0 : index
    %c0_21 = arith.constant 0 : index
    %53 = vector.load %arg5[%c0_19, %c0_20, %c0_21] : memref<1x1x128xf32, #tpu.memory_space<vmem>>, vector<1x1x128xf32>
    %54 = vector.shape_cast %53 : vector<1x1x128xf32> to vector<1x128xf32>
    %55 = vector.shape_cast %52 : vector<1x128xf32> to vector<1x1x128xf32>
    tpu.vector_store %arg5[%c0_19, %c0_20, %c0_21], %55 {strides = array<i32>} : memref<1x1x128xf32, #tpu.memory_space<vmem>>, vector<1x1x128xf32>,
    return
  }
  func.func @transform_0(%arg0: i32) -> (i32, i32) {
    %c0_i32 = arith.constant 0 : i32
    %c0_i32_0 = arith.constant 0 : i32
    %c0_i32_1 = arith.constant 0 : i32
    return %c0_i32, %c0_i32_0 : i32, i32
  }
  func.func @transform_1(%arg0: i32) -> (i32, i32) {
    %c0_i32 = arith.constant 0 : i32
    %c0_i32_0 = arith.constant 0 : i32
    %c0_i32_1 = arith.constant 0 : i32
    return %c0_i32, %c0_i32_0 : i32, i32
  }
  func.func @transform_2(%arg0: i32) -> (i32, i32, i32) {
    %c0_i32 = arith.constant 0 : i32
    %c0_i32_0 = arith.constant 0 : i32
    %c0_i32_1 = arith.constant 0 : i32
    return %arg0, %c0_i32, %c0_i32_0 : i32, i32, i32
  }
  func.func @transform_3(%arg0: i32) -> (i32, i32, i32) {
    %c0_i32 = arith.constant 0 : i32
    %c0_i32_0 = arith.constant 0 : i32
    %c0_i32_1 = arith.constant 0 : i32
    return %arg0, %c0_i32, %c0_i32_0 : i32, i32, i32
  }
  func.func @transform_4(%arg0: i32) -> (i32, i32, i32) {
    %c0_i32 = arith.constant 0 : i32
    %c0_i32_0 = arith.constant 0 : i32
    %c0_i32_1 = arith.constant 0 : i32
    return %arg0, %c0_i32, %c0_i32_0 : i32, i32, i32
  }
}

</mosaic_0001>

<bundles_post_ra>
// kernel: tpu_custom_call.1
= control target key start
LH: loop header
LB: loop body
LE: loop exit
PB: predicated region body
PF: predicated region fallthrough
CT: control target
= control target key end

     0   :  { %9 = vsyncpa [#allocation3], 0  ;;  %s904_s0 = inlined_call_operand.hbm [shape: f32[80,80], index: 0, kind: input, shape index: {}]   ;;  %s905_s1 = inlined_call_operand.hbm [shape: f32[128,128], index: 1, kind: input, shape index: {}]   ;;  %s906_s2 = inlined_call_operand.hbm [shape: f32[1,16,128], index: 2, kind: input, shape index: {}]   ;;  %s907_s3 = inlined_call_operand.hbm [shape: f32[1,16,128], index: 3, kind: input, shape index: {}]   ;;  %s908_s4 = inlined_call_operand.hbm [shape: f32[1,1,128], index: 4, kind: output, shape index: {}]  }
   0x1   :  { %10 = vsyncpa [#allocation6], 0 }
   0x2   :  { %11 = vsyncpa [#allocation9], 0 }
   0x3   :  { %12 = vsyncpa [#allocation4], 0  ;;  %s776_s15 = smov [#allocation5]   ;;  %s777_s17 = smov [#allocation2]  }
   0x4   :  { %s30_s16 = sshll.u32 %s776_s15, 4  ;;  %s18_s18 = sshll.u32 %s777_s17, 4  ;;  %s31_s16 = int_to_ptr.vmem [resolvable:$true] %s30_s16  ;;  %s808_s18 = int_to_ptr.vmem [resolvable:$true] %s18_s18 }
   0x5   :  { %s658_s21 = scalar_lea.hbm %s905_s1, 2048 }
   0x6   :  { %p659_p0 = scmp.ne.s32.totalorder %s905_s1, %s658_s21  ;;  %p662_p1 = scmp.lt.u32.totalorder %s658_s21, %s905_s1 }
   0x8   :  { %p664_p2 = pnand %p662_p1, %p659_p0 }
   0xa   :  { %667 = shalt.err (!%p664_p2)
}
   0xb   :  { %s668_s26 = scalar_lea.vmem %s31_s16, 2048  ;;  %p673_p4 = scmp.lt.s32.totalorder %s31_s16, %s31_s16 }
   0xc   :  { %p669_p3 = scmp.ne.s32.totalorder %s31_s16, %s668_s26  ;;  %p674_p5 = scmp.lt.s32.totalorder %s668_s26, %s668_s26 }
   0xe   :  { %p675_p6 = por %p674_p5, %p673_p4 }
  0x10   :  { %p676_p7 = pnand %p675_p6, %p669_p3 }
  0x12   :  { %679 = shalt.err (!%p676_p7)
}
  0x13   :  { %s778_s27 = smov 128   ;;  %s779_s28 = smov 8  }
  0x14   :  { %36 = dma.hbm_to_vmem [thread:$0]  %s905_s1, 2048, %s31_s16, [#allocation6], %s778_s27, %s778_s27, %s779_s28  }
  0x15   :  { %s680_s7 = scalar_lea.hbm %s904_s0, 1280 }
  0x16   :  { %p681_p8 = scmp.ne.s32.totalorder %s904_s0, %s680_s7  ;;  %p684_p9 = scmp.lt.u32.totalorder %s680_s7, %s904_s0 }
  0x18   :  { %p686_p10 = pnand %p684_p9, %p681_p8 }
  0x1a   :  { %689 = shalt.err (!%p686_p10)
}
  0x1b   :  { %s690_s12 = scalar_lea.vmem %s808_s18, 1280  ;;  %p695_p12 = scmp.lt.s32.totalorder %s808_s18, %s808_s18 }
  0x1c   :  { %p691_p11 = scmp.ne.s32.totalorder %s808_s18, %s690_s12  ;;  %p696_p13 = scmp.lt.s32.totalorder %s690_s12, %s690_s12 }
  0x1e   :  { %p697_p0 = por %p696_p13, %p695_p12 }
  0x20   :  { %p698_p1 = pnand %p697_p0, %p691_p11 }
  0x22   :  { %701 = shalt.err (!%p698_p1)
}
  0x23   :  { %24 = dma.hbm_to_vmem [thread:$0]  %s904_s0, 1280, %s808_s18, [#allocation3], %s778_s27, %s778_s27, %s779_s28  }
  0x24   :  { %s780_s14 = smov [#allocation7]   ;;  %s781_s16 = smov [#allocation8]  }
  0x25   :  { %s42_s15 = sshll.u32 %s780_s14, 4  ;;  %s54_s17 = sshll.u32 %s781_s16, 4  ;;  %s43_s15 = int_to_ptr.vmem [resolvable:$true] %s42_s15  ;;  %s845_s17 = int_to_ptr.vmem [resolvable:$true] %s54_s17 }
  0x26   :  { %s702_s21 = scalar_lea.hbm %s906_s2, 256 }
  0x27   :  { %p703_p2 = scmp.ne.s32.totalorder %s906_s2, %s702_s21  ;;  %p706_p3 = scmp.lt.u32.totalorder %s702_s21, %s906_s2 }
  0x29   :  { %p708_p4 = pnand %p706_p3, %p703_p2 }
  0x2b   :  { %711 = shalt.err (!%p708_p4)
}
  0x2c   :  { %s712_s0 = scalar_lea.vmem %s43_s15, 256  ;;  %p717_p6 = scmp.lt.s32.totalorder %s43_s15, %s43_s15 }
  0x2d   :  { %p713_p5 = scmp.ne.s32.totalorder %s43_s15, %s712_s0  ;;  %p718_p7 = scmp.lt.s32.totalorder %s712_s0, %s712_s0 }
  0x2f   :  { %p719_p8 = por %p718_p7, %p717_p6 }
  0x31   :  { %p720_p9 = pnand %p719_p8, %p713_p5 }
  0x33   :  { %723 = shalt.err (!%p720_p9)
}
  0x34   :  { %48 = dma.hbm_to_vmem [thread:$0]  %s906_s2, 256, %s43_s15, [#allocation6], %s778_s27, %s778_s27, %s779_s28  }
  0x35   :  { %s724_s5 = scalar_lea.hbm %s907_s3, 256 }
  0x36   :  { %p725_p10 = scmp.ne.s32.totalorder %s907_s3, %s724_s5  ;;  %p728_p11 = scmp.lt.u32.totalorder %s724_s5, %s907_s3 }
  0x38   :  { %p730_p12 = pnand %p728_p11, %p725_p10 }
  0x3a   :  { %733 = shalt.err (!%p730_p12)
}
  0x3b   :  { %s734_s10 = scalar_lea.vmem %s845_s17, 256  ;;  %p739_p0 = scmp.lt.s32.totalorder %s845_s17, %s845_s17 }
  0x3c   :  { %p735_p13 = scmp.ne.s32.totalorder %s845_s17, %s734_s10  ;;  %p740_p1 = scmp.lt.s32.totalorder %s734_s10, %s734_s10 }
  0x3e   :  { %p741_p2 = por %p740_p1, %p739_p0 }
  0x40   :  { %p742_p3 = pnand %p741_p2, %p735_p13 }
  0x42   :  { %745 = shalt.err (!%p742_p3)
}
  0x43   :  { %60 = dma.hbm_to_vmem [thread:$0]  %s907_s3, 256, %s845_s17, [#allocation9], %s778_s27, %s778_s27, %s779_s28  }
  0x44   :  { %768 = dma.done.wait [#allocation3], 1280  }
  0x45   :  { %769 = vsyncadd [#allocation3], 4294966016 }
  0x46   :  { %770 = dma.done.wait [#allocation6], 2304  }
  0x47   :  { %771 = vsyncadd [#allocation6], 4294964992 }
  0x48   :  { %772 = dma.done.wait [#allocation9], 256  }
  0x49   :  { %773 = vsyncadd [#allocation9], 4294967040  ;;  %vm121_vm0 = vcmask 654336   ;;  %v99_v0 = vld [vmem:[#allocation7] sm:$0xff]  ;;  %v100_v1 = vld [vmem:[#allocation7 + $0x8] sm:$0xff]  ;;  %s782_s3 = smov [#allocation10]  }
  0x4a   :  { %v447_v2 = vmul.f32 -1.442695, %v99_v0  ;;  %v448_v3 = vmul.f32 -1.442695, %v100_v1  ;;  %v73_v4 = vld [vmem:[#allocation2] sm:$0xff]  ;;  %v83_v5 = vld [vmem:[#allocation5] sm:$0xff] }
  0x4b   :  { %525 = vmatprep.mubr.msk.f32.mxu0 %vm121_vm0, %v73_v4  ;;  %v84_v6 = vld [vmem:[#allocation5 + $0x8] sm:$0xff]  ;;  %v85_v7 = vld [vmem:[#allocation5 + $0x10] sm:$0xff]  ;;  %v86_v9 = vld [vmem:[#allocation5 + $0x18] sm:$0xff]  ;;  %s436_s27 = sshll.u32 %s782_s3, 4  ;;  %s437_s27 = int_to_ptr.vmem [resolvable:$true] %s436_s27 }
  0x4c   :  { %646 = vpow2.f32 %v447_v2  ;;  %v607_v8 = vpack.c.bf16 %v84_v6, %v83_v5  ;;  %v611_v10 = vpack.c.bf16 %v86_v9, %v85_v7  ;;  %v87_v11 = vld [vmem:[#allocation5 + $0x20] sm:$0xff]  ;;  %v88_v12 = vld [vmem:[#allocation5 + $0x28] sm:$0xff]  ;;  %v89_v14 = vld [vmem:[#allocation5 + $0x30] sm:$0xff]  ;;  %s746_s28 = scalar_lea.vmem %s437_s27, 16  ;;  %s750_s12 = scalar_lea.vmem %s437_s27, 32 }
  0x4d   :  { %648 = vpow2.f32 %v448_v3  ;;  %v615_v13 = vpack.c.bf16 %v88_v12, %v87_v11  ;;  %v90_v15 = vld [vmem:[#allocation5 + $0x38] sm:$0xff]  ;;  %v91_v21 = vld [vmem:[#allocation5 + $0x40] sm:$0xff]  ;;  %v92_v22 = vld [vmem:[#allocation5 + $0x48] sm:$0xff]  ;;  %p747_p4 = scmp.ne.s32.totalorder %s437_s27, %s746_s28  ;;  %p751_p5 = scmp.lt.s32.totalorder %s437_s27, %s437_s27 }
  0x4e   :  { %608 = vmatprep.subr.bf16.mxu1 %v607_v8  ;;  %v619_v19 = vpack.c.bf16 %v90_v15, %v89_v14  ;;  %v623_v23 = vpack.c.bf16 %v92_v22, %v91_v21  ;;  %v93_v24 = vld [vmem:[#allocation5 + $0x50] sm:$0xff]  ;;  %v94_v25 = vld [vmem:[#allocation5 + $0x58] sm:$0xff]  ;;  %v95_v27 = vld [vmem:[#allocation5 + $0x60] sm:$0xff]  ;;  %p752_p6 = scmp.lt.s32.totalorder %s750_s12, %s746_s28 }
  0x4f   :  { %610 = vmatpush3.bf16.msra.mxu1 %v607_v8  ;;  %v627_v26 = vpack.c.bf16 %v94_v25, %v93_v24  ;;  %v96_v28 = vld [vmem:[#allocation5 + $0x68] sm:$0xff]  ;;  %v113_v29 = vld [vmem:[#allocation8] sm:$0xff]  ;;  %v114_v30 = vld [vmem:[#allocation8 + $0x8] sm:$0xff] }
  0x50   :  { %612 = vmatprep.subr.bf16.mxu1 %v611_v10  ;;  %v631_v32 = vpack.c.bf16 %v96_v28, %v95_v27  ;;  %v97_v34 = vld [vmem:[#allocation5 + $0x70] sm:$0xff]  ;;  %v98_v35 = vld [vmem:[#allocation5 + $0x78] sm:$0xff]  ;;  %v591_v37 = vpack.c.bf16 %v114_v30, %v113_v29  ;;  %v117_v42 = vmul.f32 %v113_v29, %v113_v29  ;;  %v118_v43 = vmul.f32 %v114_v30, %v114_v30  ;;  %v75_v49 = vld [vmem:[#allocation2 + $0x10] sm:$0xff]  ;;  %p753_p7 = por %p752_p6, %p751_p5 }
  0x51   :  { %v635_v40 = vpack.c.bf16 %v98_v35, %v97_v34  ;;  %v74_v48 = vld [vmem:[#allocation2 + $0x8] sm:$0xff]  ;;  %v76_v50 = vld [vmem:[#allocation2 + $0x18] sm:$0xff]  ;;  %v77_v51 = vld [vmem:[#allocation2 + $0x20] sm:$0xff] }
  0x52   :  { %v599_v44 = vpack.c.bf16 %v118_v43, %v117_v42  ;;  %v78_v52 = vld [vmem:[#allocation2 + $0x28] sm:$0xff]  ;;  %v79_v53 = vld [vmem:[#allocation2 + $0x30] sm:$0xff]  ;;  %v80_v54 = vld [vmem:[#allocation2 + $0x38] sm:$0xff]  ;;  %p754_p8 = pnand %p753_p7, %p747_p4 }
  0x53   :  { %614 = vmatpush3.bf16.msra.mxu1 %v611_v10  ;;  %v81_v55 = vld [vmem:[#allocation2 + $0x40] sm:$0xff]  ;;  %v82_v56 = vld [vmem:[#allocation2 + $0x48] sm:$0xff] }
  0x54   :  { %616 = vmatprep.subr.bf16.mxu1 %v615_v13 }
  0x56   :  { %v647_v16 = vpop.eup %646 }
  0x57   :  { %v649_v17 = vpop.eup %648  ;;  %v107_v18 = vadd.f32 1.0, %v647_v16  ;;  %618 = vmatpush3.bf16.msra.mxu1 %v615_v13 }
  0x58   :  { %v108_v20 = vadd.f32 1.0, %v649_v17  ;;  %620 = vmatprep.subr.bf16.mxu1 %v619_v19 }
  0x59   :  { %650 = vrcp.f32 %v107_v18 }
  0x5a   :  { %652 = vrcp.f32 %v108_v20 }
  0x5b   :  { %622 = vmatpush3.bf16.msra.mxu1 %v619_v19 }
  0x5c   :  { %624 = vmatprep.subr.bf16.mxu1 %v623_v23 }
  0x5f   :  { %626 = vmatpush3.bf16.msra.mxu1 %v623_v23 }
  0x60   :  { %628 = vmatprep.subr.bf16.mxu1 %v627_v26 }
  0x63   :  { %v651_v31 = vpop.eup %650  ;;  %630 = vmatpush3.bf16.msra.mxu1 %v627_v26 }
  0x64   :  { %v653_v33 = vpop.eup %652  ;;  %v115_v38 = vmul.f32 %v651_v31, %v651_v31  ;;  %632 = vmatprep.subr.bf16.mxu1 %v631_v32  ;;  %v119_v45 = vmul.f32 %v651_v31, %v113_v29 }
  0x65   :  { %v587_v36 = vpack.c.bf16 %v653_v33, %v651_v31  ;;  %v116_v39 = vmul.f32 %v653_v33, %v653_v33  ;;  %v120_v46 = vmul.f32 %v653_v33, %v114_v30 }
  0x67   :  { %588 = vmatprep.subr.bf16.mxu0 %v587_v36  ;;  %v595_v41 = vpack.c.bf16 %v116_v39, %v115_v38  ;;  %634 = vmatpush3.bf16.msra.mxu1 %v631_v32  ;;  %v603_v47 = vpack.c.bf16 %v120_v46, %v119_v45 }
  0x68   :  { %590 = vmatpush3.bf16.msra.mxu0 %v587_v36  ;;  %636 = vmatprep.subr.bf16.mxu1 %v635_v40 }
  0x69   :  { %592 = vmatprep.subr.bf16.mxu0 %v591_v37 }
  0x6b   :  { %638 = vmatpush3.bf16.msra.mxu1 %v635_v40 }
  0x6c   :  { %594 = vmatpush3.bf16.msra.mxu0 %v591_v37 }
  0x6d   :  { %596 = vmatprep.subr.bf16.mxu0 %v595_v41 }
  0x70   :  { %598 = vmatpush3.bf16.msra.mxu0 %v595_v41 }
  0x71   :  { %600 = vmatprep.subr.bf16.mxu0 %v599_v44 }
  0x74   :  { %602 = vmatpush3.bf16.msra.mxu0 %v599_v44 }
  0x75   :  { %604 = vmatprep.subr.bf16.mxu0 %v603_v47 }
  0x78   :  { %606 = vmatpush3.bf16.msra.mxu0 %v603_v47 }
  0x7b   :  { %526 = vmatmul.mubr.msk.f32.vlgmr.msra.gmra.mrb[0].mxu0 %vm121_vm0, %v74_v48 }
  0x7c   :  { %528 = vmatprep.mubr.msk.f32.mxu0 %vm121_vm0, %v75_v49 }
  0x7f   :  { %529 = vmatmul.mubr.msk.f32.gmra.mrb[2].mxu0 %vm121_vm0, %v76_v50 }
  0x80   :  { %531 = vmatprep.mubr.msk.f32.mxu0 %vm121_vm0, %v77_v51 }
  0x83   :  { %532 = vmatmul.mubr.msk.f32.gmra.mrb[4].mxu0 %vm121_vm0, %v78_v52 }
  0x84   :  { %534 = vmatprep.mubr.msk.f32.mxu0 %vm121_vm0, %v79_v53 }
  0x87   :  { %535 = vmatmul.mubr.msk.f32.gmra.mrb[6].mxu0 %vm121_vm0, %v80_v54 }
  0x88   :  { %537 = vmatprep.mubr.msk.f32.mxu0 %vm121_vm0, %v81_v55 }
  0x8b   :  { %538 = vmatmul.mubr.msk.f32.gmra.mrb[8].mxu0 %vm121_vm0, %v82_v56 }
 0x14e   :  { %v527_v57 = vpop.f32.mrb[0].mxu0 }
 0x14f   :  { %v218_v58 = vpop.f32.mrb[1].mxu0 }
 0x150   :  { %572 = vmatprep.mubr.f32.mxu1 %v218_v58 }
 0x151   :  { %573 = vmatmul.mubr.f32.vlgmr.msra.gmra.mrb[0].mxu1 %v527_v57 }
 0x152   :  { %v530_v59 = vpop.f32.mrb[2].mxu0 }
 0x153   :  { %v228_v60 = vpop.f32.mrb[3].mxu0 }
 0x154   :  { %575 = vmatprep.mubr.f32.mxu1 %v228_v60 }
 0x155   :  { %576 = vmatmul.mubr.f32.gmra.mrb[2].mxu1 %v530_v59 }
 0x156   :  { %v533_v61 = vpop.f32.mrb[4].mxu0 }
 0x157   :  { %v238_v62 = vpop.f32.mrb[5].mxu0 }
 0x158   :  { %578 = vmatprep.mubr.f32.mxu1 %v238_v62 }
 0x159   :  { %579 = vmatmul.mubr.f32.gmra.mrb[4].mxu1 %v533_v61 }
 0x15a   :  { %v536_v63 = vpop.f32.mrb[6].mxu0 }
 0x15b   :  { %v248_v0 = vpop.f32.mrb[7].mxu0 }
 0x15c   :  { %581 = vmatprep.mubr.f32.mxu1 %v248_v0 }
 0x15d   :  { %582 = vmatmul.mubr.f32.gmra.mrb[6].mxu1 %v536_v63 }
 0x15e   :  { %v539_v1 = vpop.f32.mrb[8].mxu0 }
 0x15f   :  { %v258_v2 = vpop.f32.mrb[9].mxu0 }
 0x160   :  { %584 = vmatprep.mubr.f32.mxu1 %v258_v2 }
 0x161   :  { %585 = vmatmul.mubr.f32.gmra.mrb[8].mxu1 %v539_v1 }
 0x224   :  { %v574_v3 = vpop.f32.mrb[0].mxu1 }
 0x225   :  { %v333_v4 = vpop.f32.mrb[1].mxu1  ;;  %v395_v5 = vmul.f32 2.0, %v574_v3  ;;  %v383_v10 = vmul.f32 %v574_v3, %v574_v3 }
 0x226   :  { %v394_v6 = vmul.f32 2.0, %v333_v4  ;;  %v382_v14 = vmul.f32 %v333_v4, %v333_v4 }
 0x228   :  { %v577_v7 = vpop.f32.mrb[2].mxu1 }
 0x229   :  { %v397_v8 = vmul.f32 %v577_v7, %v395_v5  ;;  %v343_v9 = vpop.f32.mrb[3].mxu1  ;;  %v387_v11 = vmul.f32 %v577_v7, %v577_v7  ;;  %v391_v12 = vmul.f32 %v577_v7, %v574_v3 }
 0x22a   :  { %v396_v13 = vmul.f32 %v394_v6, %v343_v9  ;;  %v386_v15 = vmul.f32 %v343_v9, %v343_v9  ;;  %v390_v16 = vmul.f32 %v343_v9, %v333_v4 }
 0x22b   :  { %v407_v17 = vadd.f32 %v387_v11, %v383_v10  ;;  %v399_v41 = vadd.f32 0.0001, %v397_v8 }
 0x22c   :  { %v580_v18 = vpop.f32.mrb[4].mxu1  ;;  %v406_v19 = vadd.f32 %v386_v15, %v382_v14  ;;  %v398_v44 = vadd.f32 0.0001, %v396_v13 }
 0x22d   :  { %v385_v20 = vsub.f32 %v580_v18, %v383_v10  ;;  %v353_v21 = vpop.f32.mrb[5].mxu1  ;;  %v409_v30 = vadd.f32 0.0001, %v407_v17 }
 0x22e   :  { %v384_v22 = vsub.f32 %v353_v21, %v382_v14  ;;  %v408_v34 = vadd.f32 0.0001, %v406_v19 }
 0x230   :  { %v583_v23 = vpop.f32.mrb[6].mxu1 }
 0x231   :  { %v389_v24 = vsub.f32 %v583_v23, %v387_v11  ;;  %v363_v25 = vpop.f32.mrb[7].mxu1 }
 0x232   :  { %v388_v26 = vsub.f32 %v363_v25, %v386_v15 }
 0x233   :  { %v411_v27 = vadd.f32 %v389_v24, %v385_v20 }
 0x234   :  { %v410_v28 = vadd.f32 %v388_v26, %v384_v22  ;;  %v586_v29 = vpop.f32.mrb[8].mxu1 }
 0x235   :  { %v413_v31 = vadd.f32 0.0009, %v411_v27  ;;  %v393_v32 = vsub.f32 %v586_v29, %v391_v12  ;;  %v373_v33 = vpop.f32.mrb[9].mxu1 }
 0x236   :  { %v412_v35 = vadd.f32 0.0009, %v410_v28  ;;  %v392_v36 = vsub.f32 %v373_v33, %v390_v16 }
 0x237   :  { %v415_v37 = vmul.f32 %v413_v31, %v409_v30  ;;  %v401_v38 = vmul.f32 2.0, %v393_v32 }
 0x238   :  { %v414_v39 = vmul.f32 %v412_v35, %v408_v34  ;;  %v400_v40 = vmul.f32 2.0, %v392_v36 }
 0x239   :  { %v417_v42 = vadd.f32 1e-12, %v415_v37  ;;  %v403_v43 = vadd.f32 0.0009, %v401_v38 }
 0x23a   :  { %v416_v45 = vadd.f32 1e-12, %v414_v39  ;;  %v402_v46 = vadd.f32 0.0009, %v400_v40 }
 0x23b   :  { %654 = vrcp.f32 %v417_v42  ;;  %v405_v47 = vmul.f32 %v403_v43, %v399_v41 }
 0x23c   :  { %656 = vrcp.f32 %v416_v45  ;;  %v404_v48 = vmul.f32 %v402_v46, %v398_v44 }
 0x245   :  { %v655_v49 = vpop.eup %654 }
 0x246   :  { %v657_v50 = vpop.eup %656  ;;  %v421_v51 = vmul.f32 %v655_v49, %v405_v47 }
 0x247   :  { %v420_v52 = vmul.f32 %v657_v50, %v404_v48 }
 0x249   :  { %v422_v53 = vadd.f32 %v421_v51, %v420_v52 }
 0x24b   :  { %v423_v54 = vrot.slane %v422_v53, 4 }
 0x24d   :  { %v424_v55 = vadd.f32 %v423_v54, %v422_v53 }
 0x24f   :  { %v425_v56 = vrot.slane %v424_v55, 2 }
 0x251   :  { %v426_v57 = vadd.f32 %v425_v56, %v424_v55 }
 0x253   :  { %v427_v58 = vrot.slane %v426_v57, 1 }
 0x255   :  { %v428_v59 = vadd.f32 %v427_v58, %v426_v57 }
 0x257   :  { %429 = vst [vmem:[#allocation10] sm:$0x1] %v428_v59 }
 0x258   :  { %757 = shalt.err (!%p754_p8)
}
 0x259   :  { %s758_s14 = scalar_lea.hbm %s908_s4, 16 }
 0x25a   :  { %p759_p9 = scmp.ne.s32.totalorder %s908_s4, %s758_s14  ;;  %p762_p10 = scmp.lt.u32.totalorder %s758_s14, %s908_s4 }
 0x25c   :  { %p764_p11 = pnand %p762_p10, %p759_p9 }
 0x25e   :  { %767 = shalt.err (!%p764_p11)
}
 0x25f   :  { %439 = dma.vmem_to_hbm [thread:$0]  %s437_s27, 16, %s908_s4, [#allocation4]  }
 0x260   :  { %774 = dma.done.wait [#allocation4], 16  }
 0x261   :  { %775 = vsyncadd [#allocation4], 4294967280 }
 0x262   :  { %443 = vsyncpa [#allocation3], 1 }
 0x263   :  { %444 = vsyncpa [#allocation6], 1 }
 0x264   :  { %445 = vsyncpa [#allocation9], 1 }
 0x265   :  { %446 = vsyncpa [#allocation4], 1 }

</bundles_post_ra>
